<compile_context>
chip_gen: v6e
topology: v6e:2x2x1
jax: 0.10.0
libtpu: 0.0.40
codegen_flags: <defaults>
</compile_context>

<pallas_src>
import functools

import jax
import jax.numpy as jnp
from jax.experimental import pallas as pl
from jax.experimental.pallas import tpu as pltpu


# ----------------------------- Pallas kernel ------------------------------ #
def actor_critic_kernel(
    patches_ref,   # [TILE_B*H*W, 9*Cin]  bf16  im2col patches (lane-dense)
    wconv_ref,     # [9*Cin, Cf]          bf16
    bconv_ref,     # [1, Cf]              f32
    pool_ref,      # [TILE_B, TILE_B*H*W] f32   block-diag, 1/(H*W) folded in
    state_ref,     # [TILE_B, 128]        f32   packed [hx | cx | 0]
    wzh_ref,       # [Cf+L, 4L]           bf16  stacked [wih; whh]
    blstm_ref,     # [1, 4L]              f32   bih + bhh
    wheads_ref,    # [L, 128-2L]          bf16  packed [critic | actor | 0]
    bheads_ref,    # [1, 128-2L]          f32
    out_ref,       # out: [TILE_B, 128]   f32   [h_new | c_new | critic | actor | 0]
    *,
    L,
):
    # --- backbone: 3x3 conv (single im2col matmul) + ReLU + global avg pool ---
    conv = jnp.dot(patches_ref[...], wconv_ref[...],
                   preferred_element_type=jnp.float32)        # [TILE_B*H*W, Cf]
    conv = jnp.maximum(conv + bconv_ref[...], 0.0)            # bias broadcast once
    feats = jnp.dot(pool_ref[...], conv,
                    preferred_element_type=jnp.float32)       # [TILE_B, Cf] f32

    # --- LSTMCell (PyTorch gate order i, f, g, o); merged gate matmul K=Cf+L ---
    hx = state_ref[:, 0:L]                                    # [TILE_B, L] f32
    cx = state_ref[:, L:2 * L]                                # [TILE_B, L] f32
    zh = jnp.concatenate([feats, hx], axis=1).astype(jnp.bfloat16)
    gates = (jnp.dot(zh, wzh_ref[...], preferred_element_type=jnp.float32)
             + blstm_ref[...])                                # [TILE_B, 4L] f32
    # single lane-masked activation pass over the whole 4L-wide block
    lane = jax.lax.broadcasted_iota(jnp.int32, gates.shape, 1)
    is_g = (lane >= 2 * L) & (lane < 3 * L)
    act = jnp.where(is_g, jnp.tanh(gates), jax.nn.sigmoid(gates))
    i_g = act[:, 0 * L:1 * L]
    f_g = act[:, 1 * L:2 * L]
    g_g = act[:, 2 * L:3 * L]
    o_g = act[:, 3 * L:4 * L]
    c_new = f_g * cx + i_g * g_g                              # f32 state math
    h_new = o_g * jnp.tanh(c_new)

    # --- fused heads + single lane-dense 128-wide store ---
    heads = (jnp.dot(h_new.astype(jnp.bfloat16), wheads_ref[...],
                     preferred_element_type=jnp.float32)
             + bheads_ref[...])                               # [TILE_B, 128-2L]
    out_ref[...] = jnp.concatenate([h_new, c_new, heads], axis=1)


# ------------------------------ JAX wrapper -------------------------------- #
def actor_critic_forward(x_nchw, hx, cx, params):
    B, Cin, H, W = x_nchw.shape
    Cf = params["wconv"].shape[1]
    L = params["whh"].shape[0]
    out_ch = params["wa"].shape[1]
    HW = H * W
    assert 2 * L + 1 + out_ch <= 128, "packed-output layout needs 2L+1+out_ch <= 128"
    HPACK = 128 - 2 * L

    # Batch tile: 8 fills sublanes and amortizes per-step overhead; small/ragged
    # batches run as one grid step (keeps all blocks (8,128)-legal).
    TILE_B = 8 if B % 8 == 0 else B
    grid = (B // TILE_B,)

    # lane-dense im2col in the wrapper (whole patches tensor is tiny at these sizes)
    x_nhwc = jnp.transpose(x_nchw, (0, 2, 3, 1))
    xp = jnp.pad(x_nhwc, ((0, 0), (1, 1), (1, 1), (0, 0)))
    cols = [xp[:, dh:dh + H, dw:dw + W, :] for dh in range(3) for dw in range(3)]
    patches = jnp.concatenate(cols, axis=-1).reshape(B * HW, 9 * Cin)
    patches = patches.astype(jnp.bfloat16)

    wconv = params["wconv"].astype(jnp.bfloat16)
    bconv = params["bconv"].astype(jnp.float32)

    # block-diagonal average-pool matrix with 1/(H*W) folded in (MXU pooling)
    row = jnp.arange(TILE_B, dtype=jnp.int32)[:, None]
    col = jnp.arange(TILE_B * HW, dtype=jnp.int32)[None, :]
    pool = jnp.where(col // HW == row, 1.0 / float(HW), 0.0).astype(jnp.float32)

    # merged LSTM gate weight [wih; whh] and pre-summed bias
    wzh = jnp.concatenate([params["wih"], params["whh"]], axis=0).astype(jnp.bfloat16)
    b_lstm = (params["bih"] + params["bhh"]).astype(jnp.float32)

    # packed heads [critic | actor | 0]
    w_heads = jnp.zeros((L, HPACK), jnp.float32)
    w_heads = w_heads.at[:, 0:1].set(params["wc"]).at[:, 1:1 + out_ch].set(params["wa"])
    w_heads = w_heads.astype(jnp.bfloat16)
    b_heads = jnp.zeros((1, HPACK), jnp.float32)
    b_heads = b_heads.at[:, 0:1].set(params["bc"]).at[:, 1:1 + out_ch].set(params["ba"])

    # packed 128-wide recurrent state [hx | cx | 0]; aliased onto the packed output
    state_in = jnp.zeros((B, 128), jnp.float32)
    state_in = state_in.at[:, 0:L].set(hx).at[:, L:2 * L].set(cx)

    kernel = functools.partial(actor_critic_kernel, L=L)

    # VMEM budget from the actual tile math (double-buffered inputs + conv temp),
    # with headroom; capped at v7x's 64 MiB physical VMEM.
    patches_blk = TILE_B * HW * 9 * Cin * 2
    conv_tmp = TILE_B * HW * Cf * 4
    pool_blk = TILE_B * TILE_B * HW * 4
    weights_b = ((9 * Cin * Cf + (Cf + L) * 4 * L + L * HPACK) * 2
                 + (Cf + 4 * L + HPACK) * 4)
    io_blk = TILE_B * 128 * 4
    vmem_est = 2 * patches_blk + 2 * conv_tmp + pool_blk + weights_b + 4 * io_blk
    vmem_limit = int(min(64 * 2**20, max(8 * 2**20, 8 * vmem_est)))

    flops = B * (2 * HW * 9 * Cin * Cf          # conv
                 + 2 * HW * Cf                  # pool matmul (useful part)
                 + 2 * (Cf + L) * 4 * L         # merged LSTM gates
                 + 2 * L * HPACK)               # heads
    bytes_accessed = (patches.size * 2 + wconv.size * 2 + wzh.size * 2
                      + w_heads.size * 2 + pool.size * 4 + B * 128 * 4 * 2)
    cost = pl.CostEstimate(flops=flops, transcendentals=B * 9 * L,
                           bytes_accessed=bytes_accessed)

    out = pl.pallas_call(
        kernel,
        grid=grid,
        in_specs=[
            pl.BlockSpec((TILE_B * HW, 9 * Cin), lambda b: (b, 0)),   # patches
            pl.BlockSpec((9 * Cin, Cf), lambda b: (0, 0)),            # wconv
            pl.BlockSpec((1, Cf), lambda b: (0, 0)),                  # bconv
            pl.BlockSpec((TILE_B, TILE_B * HW), lambda b: (0, 0)),    # pool matrix
            pl.BlockSpec((TILE_B, 128), lambda b: (b, 0)),            # packed state
            pl.BlockSpec((Cf + L, 4 * L), lambda b: (0, 0)),          # wzh
            pl.BlockSpec((1, 4 * L), lambda b: (0, 0)),               # b_lstm
            pl.BlockSpec((L, HPACK), lambda b: (0, 0)),               # w_heads
            pl.BlockSpec((1, HPACK), lambda b: (0, 0)),               # b_heads
        ],
        out_specs=pl.BlockSpec((TILE_B, 128), lambda b: (b, 0)),
        out_shape=jax.ShapeDtypeStruct((B, 128), jnp.float32),
        input_output_aliases={4: 0},   # packed state in -> packed output
        compiler_params=pltpu.CompilerParams(
            dimension_semantics=("parallel",),   # batch tiles split across TCs (v7x)
            vmem_limit_bytes=vmem_limit,
        ),
        cost_estimate=cost,
    )(patches, wconv, bconv, pool, state_in, wzh, b_lstm, w_heads, b_heads)

    hx_new = out[:, 0:L]
    cx_new = out[:, L:2 * L]
    critic = out[:, 2 * L:2 * L + 1]
    actor = out[:, 2 * L + 1:2 * L + 1 + out_ch]
    return critic, actor, (hx_new, cx_new)


# --------------------------- pure-JAX reference ----------------------------- #
def _im2col_3x3_same(x_nhwc):
    B, H, W, C = x_nhwc.shape
    xp = jnp.pad(x_nhwc, ((0, 0), (1, 1), (1, 1), (0, 0)))
    cols = []
    for dh in range(3):
        for dw in range(3):
            cols.append(xp[:, dh:dh + H, dw:dw + W, :])
    patches = jnp.concatenate(cols, axis=-1)
    return patches.reshape(B * H * W, 9 * C)


def actor_critic_reference(x_nchw, hx, cx, params, matmul_dtype=jnp.float32):
    B, Cin, H, W = x_nchw.shape
    L = params["whh"].shape[0]
    md = matmul_dtype
    x_nhwc = jnp.transpose(x_nchw, (0, 2, 3, 1))
    patches = _im2col_3x3_same(x_nhwc)
    conv = jnp.dot(patches.astype(md), params["wconv"].astype(md),
                   preferred_element_type=jnp.float32) + params["bconv"]
    conv = jnp.maximum(conv, 0.0)
    feats = jnp.mean(conv.reshape(B, H * W, -1), axis=1)
    gates = (jnp.dot(feats.astype(md), params["wih"].astype(md),
                     preferred_element_type=jnp.float32)
             + jnp.dot(hx.astype(md), params["whh"].astype(md),
                       preferred_element_type=jnp.float32)
             + params["bih"] + params["bhh"])
    i_g = jax.nn.sigmoid(gates[:, 0 * L:1 * L])
    f_g = jax.nn.sigmoid(gates[:, 1 * L:2 * L])
    g_g = jnp.tanh(gates[:, 2 * L:3 * L])
    o_g = jax.nn.sigmoid(gates[:, 3 * L:4 * L])
    c_new = f_g * cx + i_g * g_g
    h_new = o_g * jnp.tanh(c_new)
    critic = jnp.dot(h_new.astype(md), params["wc"].astype(md),
                     preferred_element_type=jnp.float32) + params["bc"]
    actor = jnp.dot(h_new.astype(md), params["wa"].astype(md),
                    preferred_element_type=jnp.float32) + params["ba"]
    return critic, actor, (h_new, c_new)


# --------------------------------- main ------------------------------------ #
if __name__ == "__main__":
    B, Cin, H, W = 2, 4, 16, 16
    Cf = 32          # backbone feature channels (last_feat_ch)
    L = 32           # lstm_feats
    OUT = 6          # out_ch (number of actions)

    key = jax.random.PRNGKey(0)
    ks = jax.random.split(key, 16)
    s = 0.1
    params = {
        "wconv": s * jax.random.normal(ks[0], (9 * Cin, Cf), jnp.float32),
        "bconv": s * jax.random.normal(ks[1], (1, Cf), jnp.float32),
        "wih": s * jax.random.normal(ks[2], (Cf, 4 * L), jnp.float32),
        "whh": s * jax.random.normal(ks[3], (L, 4 * L), jnp.float32),
        "bih": s * jax.random.normal(ks[4], (1, 4 * L), jnp.float32),
        "bhh": s * jax.random.normal(ks[5], (1, 4 * L), jnp.float32),
        "wc": s * jax.random.normal(ks[6], (L, 1), jnp.float32),
        "bc": s * jax.random.normal(ks[7], (1, 1), jnp.float32),
        "wa": s * jax.random.normal(ks[8], (L, OUT), jnp.float32),
        "ba": s * jax.random.normal(ks[9], (1, OUT), jnp.float32),
    }

    x = jax.random.normal(ks[10], (B, Cin, H, W), jnp.float32)   # PyTorch NCHW input
    hx0 = jax.random.normal(ks[11], (B, L), jnp.float32)
    cx0 = jax.random.normal(ks[12], (B, L), jnp.float32)

    fwd = jax.jit(actor_critic_forward)
    critic, actor, (hx1, cx1) = fwd(x, hx0, cx0, params)
    jax.block_until_ready((critic, actor, hx1, cx1))

    # matched-quantization check (bf16 matmul operands, f32 accumulation)
    rc, ra, (rh, rcx) = actor_critic_reference(x, hx0, cx0, params,
                                               matmul_dtype=jnp.bfloat16)
    assert jnp.allclose(critic, rc, atol=5e-3, rtol=5e-3)
    assert jnp.allclose(actor, ra, atol=5e-3, rtol=5e-3)
    assert jnp.allclose(hx1, rh, atol=5e-3, rtol=5e-3)
    assert jnp.allclose(cx1, rcx, atol=5e-3, rtol=5e-3)

    # loose check vs the full-f32 (PyTorch-semantics) reference
    fc, fa, (fh, fcx) = actor_critic_reference(x, hx0, cx0, params,
                                               matmul_dtype=jnp.float32)
    assert jnp.allclose(critic, fc, atol=2e-2, rtol=2e-2)
    assert jnp.allclose(actor, fa, atol=2e-2, rtol=2e-2)
    assert jnp.allclose(hx1, fh, atol=2e-2, rtol=2e-2)
    assert jnp.allclose(cx1, fcx, atol=2e-2, rtol=2e-2)

    print("KERNEL_OK")
</pallas_src>

<mosaic_0001>
module attributes {stable_mosaic.version = 11 : i64} {
  func.func @actor_critic_kernel(%arg0: i32, %arg1: memref<512x36xbf16, #tpu.memory_space<vmem>>, %arg2: memref<36x32xbf16, #tpu.memory_space<vmem>>, %arg3: memref<1x32xf32, #tpu.memory_space<vmem>>, %arg4: memref<2x512xf32, #tpu.memory_space<vmem>>, %arg5: memref<2x128xf32, #tpu.memory_space<vmem>>, %arg6: memref<64x128xbf16, #tpu.memory_space<vmem>>, %arg7: memref<1x128xf32, #tpu.memory_space<vmem>>, %arg8: memref<32x64xbf16, #tpu.memory_space<vmem>>, %arg9: memref<1x64xf32, #tpu.memory_space<vmem>>, %arg10: memref<2x128xf32, #tpu.memory_space<vmem>>) attributes {dimension_semantics = [#tpu.dimension_semantics<parallel>], iteration_bounds = array<i64: 1>, scalar_prefetch = 0 : i64, scratch_operands = 0 : i64, tpu.core_type = #tpu.core_type<tc>, window_params = [{transform_indices = @transform_0, window_bounds = array<i64: 512, 36>}, {pipeline_mode = #tpu.pipeline_mode<synchronous>, transform_indices = @transform_1, window_bounds = array<i64: 36, 32>}, {pipeline_mode = #tpu.pipeline_mode<synchronous>, transform_indices = @transform_2, window_bounds = array<i64: 1, 32>}, {pipeline_mode = #tpu.pipeline_mode<synchronous>, transform_indices = @transform_3, window_bounds = array<i64: 2, 512>}, {transform_indices = @transform_4, window_bounds = array<i64: 2, 128>}, {pipeline_mode = #tpu.pipeline_mode<synchronous>, transform_indices = @transform_5, window_bounds = array<i64: 64, 128>}, {pipeline_mode = #tpu.pipeline_mode<synchronous>, transform_indices = @transform_6, window_bounds = array<i64: 1, 128>}, {pipeline_mode = #tpu.pipeline_mode<synchronous>, transform_indices = @transform_7, window_bounds = array<i64: 32, 64>}, {pipeline_mode = #tpu.pipeline_mode<synchronous>, transform_indices = @transform_8, window_bounds = array<i64: 1, 64>}, {transform_indices = @transform_9, window_bounds = array<i64: 2, 128>}]} {
    %c0 = arith.constant 0 : index
    %c0_0 = arith.constant 0 : index
    %0 = vector.load %arg1[%c0, %c0_0] : memref<512x36xbf16, #tpu.memory_space<vmem>>, vector<512x36xbf16>
    %c0_1 = arith.constant 0 : index
    %c0_2 = arith.constant 0 : index
    %1 = vector.load %arg2[%c0_1, %c0_2] : memref<36x32xbf16, #tpu.memory_space<vmem>>, vector<36x32xbf16>
    %cst = arith.constant dense<0.000000e+00> : vector<512x32xf32>
    %2 = tpu.matmul %0, %1, %cst {dimension_numbers = #tpu.dot_dimension_numbers<[1], [0], [0], [1], [0, 0, 1, 1], [], []>} : vector<512x36xbf16>, vector<36x32xbf16>, vector<512x32xf32> -> vector<512x32xf32>
    %c0_3 = arith.constant 0 : index
    %c0_4 = arith.constant 0 : index
    %3 = vector.load %arg3[%c0_3, %c0_4] : memref<1x32xf32, #tpu.memory_space<vmem>>, vector<1x32xf32>
    %4 = vector.broadcast %3 : vector<1x32xf32> to vector<512x32xf32>
    %5 = arith.addf %2, %4 : vector<512x32xf32>
    %cst_5 = arith.constant 0.000000e+00 : f32
    %6 = vector.broadcast %cst_5 : f32 to vector<512x32xf32>
    %7 = arith.maximumf %5, %6 : vector<512x32xf32>
    %c0_6 = arith.constant 0 : index
    %c0_7 = arith.constant 0 : index
    %8 = vector.load %arg4[%c0_6, %c0_7] : memref<2x512xf32, #tpu.memory_space<vmem>>, vector<2x512xf32>
    %cst_8 = arith.constant dense<0.000000e+00> : vector<2x32xf32>
    %9 = tpu.matmul %8, %7, %cst_8 {dimension_numbers = #tpu.dot_dimension_numbers<[1], [0], [0], [1], [0, 0, 1, 1], [], []>} : vector<2x512xf32>, vector<512x32xf32>, vector<2x32xf32> -> vector<2x32xf32>
    %c0_9 = arith.constant 0 : index
    %c0_10 = arith.constant 0 : index
    %10 = vector.load %arg5[%c0_9, %c0_10] : memref<2x128xf32, #tpu.memory_space<vmem>>, vector<2x32xf32>
    %c0_11 = arith.constant 0 : index
    %c32 = arith.constant 32 : index
    %11 = vector.load %arg5[%c0_11, %c32] : memref<2x128xf32, #tpu.memory_space<vmem>>, vector<2x32xf32>
    %12 = tpu.concatenate %9, %10 in 1 : vector<2x32xf32>, vector<2x32xf32> -> vector<2x64xf32>
    %13 = arith.truncf %12 : vector<2x64xf32> to vector<2x64xbf16>
    %c0_12 = arith.constant 0 : index
    %c0_13 = arith.constant 0 : index
    %14 = vector.load %arg6[%c0_12, %c0_13] : memref<64x128xbf16, #tpu.memory_space<vmem>>, vector<64x128xbf16>
    %cst_14 = arith.constant dense<0.000000e+00> : vector<2x128xf32>
    %15 = tpu.matmul %13, %14, %cst_14 {dimension_numbers = #tpu.dot_dimension_numbers<[1], [0], [0], [1], [0, 0, 1, 1], [], []>} : vector<2x64xbf16>, vector<64x128xbf16>, vector<2x128xf32> -> vector<2x128xf32>
    %c0_15 = arith.constant 0 : index
    %c0_16 = arith.constant 0 : index
    %16 = vector.load %arg7[%c0_15, %c0_16] : memref<1x128xf32, #tpu.memory_space<vmem>>, vector<1x128xf32>
    %17 = vector.broadcast %16 : vector<1x128xf32> to vector<2x128xf32>
    %18 = arith.addf %15, %17 : vector<2x128xf32>
    %19 = tpu.iota {dimensions = array<i32: 1>} : vector<2x128xi32>
    %c64_i32 = arith.constant 64 : i32
    %20 = vector.broadcast %c64_i32 : i32 to vector<2x128xi32>
    %21 = arith.cmpi sge, %19, %20 : vector<2x128xi32>
    %c96_i32 = arith.constant 96 : i32
    %22 = vector.broadcast %c96_i32 : i32 to vector<2x128xi32>
    %23 = arith.cmpi slt, %19, %22 : vector<2x128xi32>
    %24 = arith.andi %21, %23 : vector<2x128xi1>
    %25 = math.tanh %18 : vector<2x128xf32>
    %26 = arith.negf %18 : vector<2x128xf32>
    %27 = math.exp %26 : vector<2x128xf32>
    %cst_17 = arith.constant 1.000000e+00 : f32
    %28 = vector.broadcast %cst_17 : f32 to vector<2x128xf32>
    %29 = arith.addf %28, %27 : vector<2x128xf32>
    %30 = arith.divf %28, %29 : vector<2x128xf32>
    %31 = arith.select %24, %25, %30 : vector<2x128xi1>, vector<2x128xf32>
    %32 = vector.extract_strided_slice %31 {offsets = [0, 0], sizes = [2, 32], strides = [1, 1]} : vector<2x128xf32> to vector<2x32xf32>
    %33 = vector.extract_strided_slice %31 {offsets = [0, 32], sizes = [2, 32], strides = [1, 1]} : vector<2x128xf32> to vector<2x32xf32>
    %34 = vector.extract_strided_slice %31 {offsets = [0, 64], sizes = [2, 32], strides = [1, 1]} : vector<2x128xf32> to vector<2x32xf32>
    %35 = vector.extract_strided_slice %31 {offsets = [0, 96], sizes = [2, 32], strides = [1, 1]} : vector<2x128xf32> to vector<2x32xf32>
    %36 = arith.mulf %33, %11 : vector<2x32xf32>
    %37 = arith.mulf %32, %34 : vector<2x32xf32>
    %38 = arith.addf %36, %37 : vector<2x32xf32>
    %39 = math.tanh %38 : vector<2x32xf32>
    %40 = arith.mulf %35, %39 : vector<2x32xf32>
    %41 = arith.truncf %40 : vector<2x32xf32> to vector<2x32xbf16>
    %c0_18 = arith.constant 0 : index
    %c0_19 = arith.constant 0 : index
    %42 = vector.load %arg8[%c0_18, %c0_19] : memref<32x64xbf16, #tpu.memory_space<vmem>>, vector<32x64xbf16>
    %cst_20 = arith.constant dense<0.000000e+00> : vector<2x64xf32>
    %43 = tpu.matmul %41, %42, %cst_20 {dimension_numbers = #tpu.dot_dimension_numbers<[1], [0], [0], [1], [0, 0, 1, 1], [], []>} : vector<2x32xbf16>, vector<32x64xbf16>, vector<2x64xf32> -> vector<2x64xf32>
    %c0_21 = arith.constant 0 : index
    %c0_22 = arith.constant 0 : index
    %44 = vector.load %arg9[%c0_21, %c0_22] : memref<1x64xf32, #tpu.memory_space<vmem>>, vector<1x64xf32>
    %45 = vector.broadcast %44 : vector<1x64xf32> to vector<2x64xf32>
    %46 = arith.addf %43, %45 : vector<2x64xf32>
    %47 = tpu.concatenate %40, %38, %46 in 1 : vector<2x32xf32>, vector<2x32xf32>, vector<2x64xf32> -> vector<2x128xf32>
    %c0_23 = arith.constant 0 : index
    %c0_24 = arith.constant 0 : index
    %48 = vector.load %arg10[%c0_23, %c0_24] : memref<2x128xf32, #tpu.memory_space<vmem>>, vector<2x128xf32>
    tpu.vector_store %arg10[%c0_23, %c0_24], %47 {strides = array<i32>} : memref<2x128xf32, #tpu.memory_space<vmem>>, vector<2x128xf32>,
    return
  }
  func.func @transform_0(%arg0: i32) -> (i32, i32) {
    %c0_i32 = arith.constant 0 : i32
    %c0_i32_0 = arith.constant 0 : i32
    return %arg0, %c0_i32 : i32, i32
  }
  func.func @transform_1(%arg0: i32) -> (i32, i32) {
    %c0_i32 = arith.constant 0 : i32
    %c0_i32_0 = arith.constant 0 : i32
    %c0_i32_1 = arith.constant 0 : i32
    return %c0_i32, %c0_i32_0 : i32, i32
  }
  func.func @transform_2(%arg0: i32) -> (i32, i32) {
    %c0_i32 = arith.constant 0 : i32
    %c0_i32_0 = arith.constant 0 : i32
    %c0_i32_1 = arith.constant 0 : i32
    return %c0_i32, %c0_i32_0 : i32, i32
  }
  func.func @transform_3(%arg0: i32) -> (i32, i32) {
    %c0_i32 = arith.constant 0 : i32
    %c0_i32_0 = arith.constant 0 : i32
    %c0_i32_1 = arith.constant 0 : i32
    return %c0_i32, %c0_i32_0 : i32, i32
  }
  func.func @transform_4(%arg0: i32) -> (i32, i32) {
    %c0_i32 = arith.constant 0 : i32
    %c0_i32_0 = arith.constant 0 : i32
    return %arg0, %c0_i32 : i32, i32
  }
  func.func @transform_5(%arg0: i32) -> (i32, i32) {
    %c0_i32 = arith.constant 0 : i32
    %c0_i32_0 = arith.constant 0 : i32
    %c0_i32_1 = arith.constant 0 : i32
    return %c0_i32, %c0_i32_0 : i32, i32
  }
  func.func @transform_6(%arg0: i32) -> (i32, i32) {
    %c0_i32 = arith.constant 0 : i32
    %c0_i32_0 = arith.constant 0 : i32
    %c0_i32_1 = arith.constant 0 : i32
    return %c0_i32, %c0_i32_0 : i32, i32
  }
  func.func @transform_7(%arg0: i32) -> (i32, i32) {
    %c0_i32 = arith.constant 0 : i32
    %c0_i32_0 = arith.constant 0 : i32
    %c0_i32_1 = arith.constant 0 : i32
    return %c0_i32, %c0_i32_0 : i32, i32
  }
  func.func @transform_8(%arg0: i32) -> (i32, i32) {
    %c0_i32 = arith.constant 0 : i32
    %c0_i32_0 = arith.constant 0 : i32
    %c0_i32_1 = arith.constant 0 : i32
    return %c0_i32, %c0_i32_0 : i32, i32
  }
  func.func @transform_9(%arg0: i32) -> (i32, i32) {
    %c0_i32 = arith.constant 0 : i32
    %c0_i32_0 = arith.constant 0 : i32
    return %arg0, %c0_i32 : i32, i32
  }
}

</mosaic_0001>

<bundles_post_ra>
// kernel: actor_critic_forward.1
= control target key start
LH: loop header
LB: loop body
LE: loop exit
PB: predicated region body
PF: predicated region fallthrough
CT: control target
= control target key end

     0   :  { %vm381_vm0 = vcmask 1041408   ;;  %vm284_vm1 = vcmask 293888   ;;  %v1452_v36 = vmov 1983009808   ;;  %v744_v38 = vlaneseq  ;;  %s1453_s16 = smov 32   ;;  %s1894_s1 = inlined_call_operand.vmem [shape: bf16[36,32], index: 1, kind: input, shape index: {}]   ;;  %s1895_s0 = inlined_call_operand.vmem [shape: bf16[512,36], index: 0, kind: input, shape index: {}]   ;;  %s1896_s3 = inlined_call_operand.vmem [shape: f32[2,512], index: 3, kind: input, shape index: {}]   ;;  %s1897_s4 = inlined_call_operand.vmem [shape: f32[2,128], index: 4, kind: input, shape index: {}, may-alias: {4,9}]   ;;  %s1898_s2 = inlined_call_operand.vmem [shape: f32[1,32], index: 2, kind: input, shape index: {}]   ;;  %s1899_s5 = inlined_call_operand.vmem [shape: bf16[64,128], index: 5, kind: input, shape index: {}]   ;;  %s1900_s6 = inlined_call_operand.vmem [shape: f32[1,128], index: 6, kind: input, shape index: {}]   ;;  %s1901_s7 = inlined_call_operand.vmem [shape: bf16[32,64], index: 7, kind: input, shape index: {}]   ;;  %s1902_s8 = inlined_call_operand.vmem [shape: f32[1,64], index: 8, kind: input, shape index: {}]   ;;  %s1903_s9 = inlined_call_operand.vmem [shape: f32[2,128], index: 9, kind: output, shape index: {}, may-alias: {4,9}]  }
   0x1   :  { %v1402_v0 = vld [vmem:[%s1894_s1 + $0x10] ss:$0 sps:$4 sm:$0x33]   ;;  %v1403_v1 = vld [vmem:[%s1894_s1 + $0x8] sm:$0xff]   ;;  %v1405_v3 = vld [vmem:[%s1895_s0] sm:$0xff]   ;;  %v742_v37 = vunpack.c.l.s4 %v1452_v36  ;;  %vm1455_vm2 = vmmov 0  }
   0x2   :  { %1395 = vmatprep.subr.msk.bf16.mxu0 %vm381_vm0, %v1402_v0  ;;  %v383_v2 = vsel %vm381_vm0, %v1402_v0, 0  ;;  %1396 = vmatprep.subr.msk.bf16.mxu1 %vm381_vm0, %v1402_v0  ;;  %v1404_v4 = vld [vmem:[%s1894_s1] sm:$0xff]   ;;  %v1406_v5 = vld [vmem:[%s1895_s0 + $0x8] sm:$0xff]   ;;  %v1407_v6 = vld [vmem:[%s1895_s0 + $0x10] sm:$0xff]   ;;  %v745_v40 = vshrl.u32 %v744_v38, 7  ;;  %vm906_vm3 = vcmask 261120  }
   0x3   :  { %1300 = vmatpush3.bf16.msra.mxu0 %v383_v2  ;;  %1392 = vmatpush3.bf16.msra.mxu1 %v383_v2  ;;  %v1408_v7 = vld [vmem:[%s1895_s0 + $0x18] sm:$0xff]   ;;  %v1409_v8 = vld [vmem:[%s1895_s0 + $0x20] sm:$0xff]   ;;  %v1422_v10 = vld [vmem:[%s1895_s0 + $0xc8] sm:$0xff]   ;;  %v743_v39 = vunpack.c.0.s8 %v742_v37  ;;  %vm948_vm4 = vcmask 523264  }
   0x4   :  { %1301 = vmatprep.subr.bf16.mxu0 %v1403_v1  ;;  %1390 = vmatprep.subr.bf16.mxu1 %v1403_v1  ;;  %v1421_v9 = vld [vmem:[%s1895_s0 + $0xc0] sm:$0xff]   ;;  %v1425_v11 = vld [vmem:[%s1895_s0 + $0xd0] sm:$0xff]   ;;  %v1410_v12 = vld [vmem:[%s1895_s0 + $0x28] sm:$0xff]  }
   0x5   :  { %1305 = vmatprep.mubr.msk.bf16.mxu0 %vm284_vm1, %v1405_v3  ;;  %1353 = vmatprep.mubr.msk.bf16.mxu1 %vm284_vm1, %v1421_v9  ;;  %v1411_v13 = vld [vmem:[%s1895_s0 + $0x30] sm:$0xff]   ;;  %v1426_v14 = vld [vmem:[%s1895_s0 + $0xd8] sm:$0xff]   ;;  %v1429_v15 = vld [vmem:[%s1895_s0 + $0xe0] sm:$0xff]   ;;  %v746_v41 = vsub.s32 %v743_v39, %v745_v40 }
   0x6   :  { %v1412_v16 = vld [vmem:[%s1895_s0 + $0x38] sm:$0xff]   ;;  %v1430_v17 = vld [vmem:[%s1895_s0 + $0xe8] sm:$0xff]   ;;  %v1413_v18 = vld [vmem:[%s1895_s0 + $0x40] sm:$0xff]  }
   0x7   :  { %1302 = vmatpush3.bf16.msra.mxu0 %v1403_v1  ;;  %1393 = vmatpush3.bf16.msra.mxu1 %v1403_v1  ;;  %v1433_v19 = vld [vmem:[%s1895_s0 + $0xf0] sm:$0xff]   ;;  %v1414_v20 = vld [vmem:[%s1895_s0 + $0x48] sm:$0xff]   ;;  %v1434_v21 = vld [vmem:[%s1895_s0 + $0xf8] sm:$0xff]  }
   0x8   :  { %1303 = vmatprep.subr.bf16.mxu0 %v1404_v4  ;;  %1391 = vmatprep.subr.bf16.mxu1 %v1404_v4  ;;  %v1415_v22 = vld [vmem:[%s1895_s0 + $0x50] sm:$0xff]   ;;  %v1416_v23 = vld [vmem:[%s1895_s0 + $0x58] sm:$0xff]   ;;  %v1417_v24 = vld [vmem:[%s1895_s0 + $0x60] sm:$0xff]  }
   0x9   :  { %v1418_v25 = vld [vmem:[%s1895_s0 + $0x68] sm:$0xff]   ;;  %v1419_v26 = vld [vmem:[%s1895_s0 + $0x70] sm:$0xff]   ;;  %v1420_v27 = vld [vmem:[%s1895_s0 + $0x78] sm:$0xff]  }
   0xa   :  { %v1423_v28 = vld [vmem:[%s1895_s0 + $0x80] sm:$0xff]   ;;  %v1424_v29 = vld [vmem:[%s1895_s0 + $0x88] sm:$0xff]   ;;  %v1427_v30 = vld [vmem:[%s1895_s0 + $0x90] sm:$0xff]  }
   0xb   :  { %1304 = vmatpush3.bf16.msra.mxu0 %v1404_v4  ;;  %1394 = vmatpush3.bf16.msra.mxu1 %v1404_v4  ;;  %v1428_v31 = vld [vmem:[%s1895_s0 + $0x98] sm:$0xff]   ;;  %v1431_v32 = vld [vmem:[%s1895_s0 + $0xa0] sm:$0xff]   ;;  %v1432_v33 = vld [vmem:[%s1895_s0 + $0xa8] sm:$0xff]  }
   0xc   :  { %v1435_v34 = vld [vmem:[%s1895_s0 + $0xb0] sm:$0xff]   ;;  %v1436_v35 = vld [vmem:[%s1895_s0 + $0xb8] sm:$0xff]   ;;  %v738_v42 = vld [vmem:[%s1896_s3] sm:$0xff] }
   0xd   :  { %v1648_v43 = vrot.slane %v738_v42, %v746_v41  ;;  %v740_v45 = vcombine.high %v738_v42, %v738_v42  ;;  %v1661_v49 = vld [vmem:[%s1897_s4] sm:$0x3] }
   0xe   :  { %1306 = vmatmul.mubr.msk.bf16.vlgmr.msra.gmra.mxu0 %vm284_vm1, %v1406_v5  ;;  %1354 = vmatmul.mubr.msk.bf16.vlgmr.msra.gmra.mxu1 %vm284_vm1, %v1422_v10 }
   0xf   :  { %1309 = vmatprep.mubr.msk.bf16.mxu0 %vm284_vm1, %v1407_v6  ;;  %1357 = vmatprep.mubr.msk.bf16.mxu1 %vm284_vm1, %v1425_v11  ;;  %v755_v44 = vcombine.high %v1648_v43, %v1648_v43  ;;  %v1652_v46 = vrot.slane %v740_v45, %v746_v41 }
  0x10   :  { %903 = vrot.lane.b32.xlu0 %v1661_v49, %s1453_s16 }
  0x16   :  { %1310 = vmatmul.mubr.msk.bf16.gmra.mxu0 %vm284_vm1, %v1408_v7  ;;  %1358 = vmatmul.mubr.msk.bf16.gmra.mxu1 %vm284_vm1, %v1426_v14 }
  0x17   :  { %1313 = vmatprep.mubr.msk.bf16.mxu0 %vm284_vm1, %v1409_v8  ;;  %1361 = vmatprep.mubr.msk.bf16.mxu1 %vm284_vm1, %v1429_v15 }
  0x1e   :  { %1314 = vmatmul.mubr.msk.bf16.gmra.mxu0 %vm284_vm1, %v1410_v12  ;;  %1362 = vmatmul.mubr.msk.bf16.gmra.mxu1 %vm284_vm1, %v1430_v17 }
  0x1f   :  { %1317 = vmatprep.mubr.msk.bf16.mxu0 %vm284_vm1, %v1411_v13  ;;  %1365 = vmatprep.mubr.msk.bf16.mxu1 %vm284_vm1, %v1433_v19 }
  0x26   :  { %1318 = vmatmul.mubr.msk.bf16.gmra.mxu0 %vm284_vm1, %v1412_v16  ;;  %1366 = vmatmul.mubr.msk.bf16.gmra.mxu1 %vm284_vm1, %v1434_v21  ;;  %v1714_v21 = vld [vmem:[%s1898_s2] ss:$0 sm:$0xff] }
  0x27   :  { %1321 = vmatprep.mubr.msk.bf16.mxu0 %vm284_vm1, %v1413_v18  ;;  %825 = vmatprep.mubr.f32.mxu1 %v755_v44 }
  0x2e   :  { %1322 = vmatmul.mubr.msk.bf16.gmra.mxu0 %vm284_vm1, %v1414_v20 }
  0x2f   :  { %1325 = vmatprep.mubr.msk.bf16.mxu0 %vm284_vm1, %v1415_v22 }
  0x36   :  { %1326 = vmatmul.mubr.msk.bf16.gmra.mxu0 %vm284_vm1, %v1416_v23 }
  0x37   :  { %1329 = vmatprep.mubr.msk.bf16.mxu0 %vm284_vm1, %v1417_v24 }
  0x3e   :  { %1330 = vmatmul.mubr.msk.bf16.gmra.mxu0 %vm284_vm1, %v1418_v25 }
  0x3f   :  { %1333 = vmatprep.mubr.msk.bf16.mxu0 %vm284_vm1, %v1419_v26 }
  0x46   :  { %1334 = vmatmul.mubr.msk.bf16.gmra.mxu0 %vm284_vm1, %v1420_v27 }
  0x47   :  { %1337 = vmatprep.mubr.msk.bf16.mxu0 %vm284_vm1, %v1423_v28 }
  0x4e   :  { %1338 = vmatmul.mubr.msk.bf16.gmra.mxu0 %vm284_vm1, %v1424_v29 }
  0x4f   :  { %1341 = vmatprep.mubr.msk.bf16.mxu0 %vm284_vm1, %v1427_v30 }
  0x56   :  { %1342 = vmatmul.mubr.msk.bf16.gmra.mxu0 %vm284_vm1, %v1428_v31 }
  0x57   :  { %1345 = vmatprep.mubr.msk.bf16.mxu0 %vm284_vm1, %v1431_v32 }
  0x5e   :  { %1346 = vmatmul.mubr.msk.bf16.gmra.mxu0 %vm284_vm1, %v1432_v33 }
  0x5f   :  { %1349 = vmatprep.mubr.msk.bf16.mxu0 %vm284_vm1, %v1435_v34 }
  0x66   :  { %1350 = vmatmul.mubr.msk.bf16.gmra.mxu0 %vm284_vm1, %v1436_v35 }
  0xce   :  { %v1654_v47 = vpop.f32.mrf.mxu0  ;;  %v1683_v1 = vpop.f32.mrf.mxu1 }
  0xd0   :  { %v1656_v48 = vpop.f32.mrf.mxu0  ;;  %v1689_v4 = vpop.f32.mrf.mxu1 }
  0xd2   :  { %v1665_v50 = vpop.f32.mrf.mxu0  ;;  %v1695_v7 = vpop.f32.mrf.mxu1 }
  0xd4   :  { %v1667_v51 = vpop.f32.mrf.mxu0  ;;  %v1701_v10 = vpop.f32.mrf.mxu1 }
  0xd6   :  { %v1669_v52 = vpop.f32.mrf.mxu0  ;;  %v1705_v13 = vpop.f32.mrf.mxu1 }
  0xd8   :  { %v1671_v53 = vpop.f32.mrf.mxu0  ;;  %v1707_v16 = vpop.f32.mrf.mxu1 }
  0xda   :  { %v1673_v54 = vpop.f32.mrf.mxu0  ;;  %v1709_v19 = vpop.f32.mrf.mxu1 }
  0xdc   :  { %v1675_v55 = vpop.f32.mrf.mxu0  ;;  %v1717_v24 = vpop.f32.mrf.mxu1 }
  0xde   :  { %v1315_v56 = vpop.f32.mrf.mxu0  ;;  %v1726_v34 = vpop.f32.mrf.mxu1 }
  0xe0   :  { %v1677_v57 = vpop.f32.mrf.mxu0 }
  0xe2   :  { %v1316_v58 = vpop.f32.mrf.mxu0 }
  0xe3   :  { %v463_v44 = vadd.f32 %v1316_v58, %v1714_v21 }
  0xe4   :  { %v1679_v59 = vpop.f32.mrf.mxu0 }
  0xe5   :  { %v685_v58 = vmax.f32 %v463_v44, 0.0  ;;  %v439_v44 = vadd.f32 %v1714_v21, %v1675_v55 }
  0xe6   :  { %v1319_v60 = vpop.f32.mrf.mxu0 }
  0xe7   :  { %v476_v27 = vadd.f32 %v1319_v60, %v1714_v21 }
  0xe8   :  { %v467_v61 = vpop.f32.mrf.mxu0 }
  0xe9   :  { %v688_v37 = vmax.f32 %v476_v27, 0.0  ;;  %v468_v39 = vadd.f32 %v1714_v21, %v467_v61  ;;  %v460_v61 = vadd.f32 %v1315_v56, %v1714_v21 }
  0xea   :  { %v1320_v62 = vpop.f32.mrf.mxu0 }
  0xeb   :  { %v479_v22 = vadd.f32 %v1320_v62, %v1714_v21  ;;  %v1736_v62 = vpop.f32.mrf.mxu1 }
  0xec   :  { %v470_v63 = vpop.f32.mrf.mxu0 }
  0xed   :  { %v689_v31 = vmax.f32 %v479_v22, 0.0  ;;  %v471_v32 = vadd.f32 %v1714_v21, %v470_v63 }
  0xee   :  { %v1681_v0 = vpop.f32.mrf.mxu0 }
  0xef   :  { %v687_v45 = vmax.f32 %v471_v32, 0.0 }
  0xf0   :  { %v1685_v2 = vpop.f32.mrf.mxu0 }
  0xf2   :  { %v1687_v3 = vpop.f32.mrf.mxu0 }
  0xf4   :  { %v1691_v5 = vpop.f32.mrf.mxu0 }
  0xf6   :  { %v1693_v6 = vpop.f32.mrf.mxu0 }
  0xf8   :  { %v1697_v8 = vpop.f32.mrf.mxu0 }
  0xfa   :  { %v1699_v9 = vpop.f32.mrf.mxu0 }
  0xfc   :  { %v1703_v11 = vpop.f32.mrf.mxu0 }
  0xfe   :  { %v1331_v12 = vpop.f32.mrf.mxu0 }
  0xff   :  { %v524_v63 = vadd.f32 %v1331_v12, %v1714_v21  ;;  %v1747_v12 = vpop.f32.mrf.mxu1 }
 0x100   :  { %v515_v14 = vpop.f32.mrf.mxu0 }
 0x101   :  { %v700_v27 = vmax.f32 %v524_v63, 0.0  ;;  %v516_v56 = vadd.f32 %v1714_v21, %v515_v14  ;;  %v1760_v14 = vpop.f32.mrf.mxu1 }
 0x102   :  { %v1332_v15 = vpop.f32.mrf.mxu0 }
 0x103   :  { %v527_v41 = vadd.f32 %v1332_v15, %v1714_v21 }
 0x104   :  { %v518_v17 = vpop.f32.mrf.mxu0 }
 0x105   :  { %v701_v15 = vmax.f32 %v527_v41, 0.0 }
 0x106   :  { %v1335_v18 = vpop.f32.mrf.mxu0 }
 0x107   :  { %v540_v25 = vadd.f32 %v1335_v18, %v1714_v21 }
 0x108   :  { %v531_v20 = vpop.f32.mrf.mxu0 }
 0x109   :  { %v704_v35 = vmax.f32 %v540_v25, 0.0  ;;  %v532_v36 = vadd.f32 %v1714_v21, %v531_v20  ;;  %v686_v20 = vmax.f32 %v468_v39, 0.0  ;;  %v455_v25 = vadd.f32 %v1714_v21, %v1679_v59 }
 0x10a   :  { %v1336_v23 = vpop.f32.mrf.mxu0 }
 0x10b   :  { %v543_v26 = vadd.f32 %v1336_v23, %v1714_v21  ;;  %v702_v18 = vmax.f32 %v532_v36, 0.0  ;;  %v519_v23 = vadd.f32 %v1714_v21, %v518_v17  ;;  %v511_v17 = vadd.f32 %v1699_v9, %v1714_v21 }
 0x10c   :  { %v534_v28 = vpop.f32.mrf.mxu0  ;;  %v683_v32 = vmax.f32 %v455_v25, 0.0  ;;  %v698_v36 = vmax.f32 %v516_v56, 0.0 }
 0x10d   :  { %v705_v29 = vmax.f32 %v543_v26, 0.0  ;;  %v535_v30 = vadd.f32 %v1714_v21, %v534_v28  ;;  %v684_v28 = vmax.f32 %v460_v61, 0.0  ;;  %v699_v59 = vmax.f32 %v519_v23, 0.0 }
 0x10e   :  { %v1724_v33 = vpop.f32.mrf.mxu0  ;;  %v697_v41 = vmax.f32 %v511_v17, 0.0  ;;  %v436_v61 = vadd.f32 %v1714_v21, %v1671_v53  ;;  %v679_v23 = vmax.f32 %v439_v44, 0.0  ;;  %v428_v53 = vadd.f32 %v1654_v47, %v1714_v21 }
 0x10f   :  { %1221 = vmatprep.subr.mxu1 %v705_v29  ;;  %v703_v42 = vmax.f32 %v535_v30, 0.0  ;;  %v452_v29 = vadd.f32 %v1714_v21, %v1677_v57  ;;  %v508_v57 = vadd.f32 %v1693_v6, %v1714_v21  ;;  %v1367_v6 = vpop.f32.mrf.mxu1  ;;  %v423_v17 = vadd.f32 %v1714_v21, %v1667_v51 }
 0x110   :  { %v1730_v40 = vpop.f32.mrf.mxu0  ;;  %1222 = vmatpush3.msra.mxu1 %v689_v31  ;;  %v447_v31 = vadd.f32 %v1673_v54, %v1714_v21  ;;  %v503_v54 = vadd.f32 %v1714_v21, %v1703_v11  ;;  %v495_v11 = vadd.f32 %v1687_v3, %v1714_v21  ;;  %v678_v56 = vmax.f32 %v436_v61, 0.0 }
 0x111   :  { %1223 = vmatprep.subr.mxu1 %v704_v35  ;;  %v682_v9 = vmax.f32 %v452_v29, 0.0  ;;  %v696_v63 = vmax.f32 %v508_v57, 0.0  ;;  %v659_v25 = vpop.f32.mrf.mxu1  ;;  %v484_v47 = vadd.f32 %v1714_v21, %v1685_v2  ;;  %v420_v57 = vadd.f32 %v1714_v21, %v1656_v48 }
 0x112   :  { %v1734_v60 = vpop.f32.mrf.mxu0  ;;  %1224 = vmatpush3.msra.mxu1 %v688_v37  ;;  %v444_v37 = vadd.f32 %v1669_v52, %v1714_v21  ;;  %v500_v52 = vadd.f32 %v1714_v21, %v1697_v8  ;;  %v695_v55 = vmax.f32 %v503_v54, 0.0  ;;  %v492_v8 = vadd.f32 %v1681_v0, %v1714_v21 }
 0x113   :  { %1225 = vmatprep.subr.mxu1 %v703_v42  ;;  %v681_v42 = vmax.f32 %v447_v31, 0.0  ;;  %v693_v3 = vmax.f32 %v495_v11, 0.0  ;;  %v690_v54 = vmax.f32 %v484_v47, 0.0  ;;  %v674_v44 = vmax.f32 %v420_v57, 0.0 }
 0x114   :  { %v1740_v22 = vpop.f32.mrf.mxu0  ;;  %1226 = vmatpush3.msra.mxu1 %v687_v45  ;;  %v692_v31 = vmax.f32 %v492_v8, 0.0  ;;  %v639_v47 = vadd.f32 %v1709_v19, %v1714_v21  ;;  %v636_v57 = vadd.f32 %v1705_v13, %v1714_v21  ;;  %v631_v19 = vadd.f32 %v1714_v21, %v1717_v24 }
 0x115   :  { %1227 = vmatprep.subr.mxu1 %v702_v18  ;;  %v680_v18 = vmax.f32 %v444_v37, 0.0  ;;  %v628_v13 = vadd.f32 %v1714_v21, %v1707_v16 }
 0x116   :  { %v1745_v26 = vpop.f32.mrf.mxu0  ;;  %1228 = vmatpush3.msra.mxu1 %v686_v20  ;;  %v727_v24 = vmax.f32 %v631_v19, 0.0 }
 0x117   :  { %1229 = vmatprep.subr.mxu1 %v701_v15  ;;  %v431_v15 = vadd.f32 %v1665_v50, %v1714_v21  ;;  %v487_v50 = vadd.f32 %v1714_v21, %v1691_v5  ;;  %v726_v16 = vmax.f32 %v628_v13, 0.0 }
 0x118   :  { %v1752_v30 = vpop.f32.mrf.mxu0  ;;  %1230 = vmatpush3.msra.mxu1 %v685_v58 }
 0x119   :  { %1231 = vmatprep.subr.mxu1 %v700_v27  ;;  %v694_v27 = vmax.f32 %v500_v52, 0.0  ;;  %v677_v29 = vmax.f32 %v431_v15, 0.0  ;;  %v691_v5 = vmax.f32 %v487_v50, 0.0  ;;  %v756_v52 = vcombine.high %v1652_v46, %v1652_v46 }
 0x11a   :  { %v1758_v35 = vpop.f32.mrf.mxu0  ;;  %1232 = vmatpush3.msra.mxu1 %v684_v28  ;;  %v660_v15 = vadd.f32 %v1714_v21, %v659_v25  ;;  %v652_v25 = vadd.f32 %v1726_v34, %v1714_v21  ;;  %v644_v34 = vadd.f32 %v1714_v21, %v1736_v62 }
 0x11b   :  { %1233 = vmatprep.subr.mxu1 %v699_v59  ;;  %v1368_v59 = vpop.f32.mrf.mxu1 }
 0x11c   :  { %v1766_v39 = vpop.f32.mrf.mxu0  ;;  %1234 = vmatpush3.msra.mxu1 %v683_v32  ;;  %v676_v32 = vmax.f32 %v428_v53, 0.0  ;;  %v671_v37 = vadd.f32 %v1368_v59, %v1714_v21  ;;  %v734_v50 = vmax.f32 %v660_v15, 0.0  ;;  %v730_v62 = vmax.f32 %v644_v34, 0.0 }
 0x11d   :  { %1235 = vmatprep.subr.mxu1 %v698_v36  ;;  %v662_v51 = vpop.f32.mrf.mxu1 }
 0x11e   :  { %v1772_v45 = vpop.f32.mrf.mxu0  ;;  %1236 = vmatpush3.msra.mxu1 %v682_v9  ;;  %v675_v9 = vmax.f32 %v423_v17, 0.0  ;;  %v663_v61 = vadd.f32 %v1714_v21, %v662_v51 }
 0x11f   :  { %1237 = vmatprep.subr.mxu1 %v697_v41 }
 0x120   :  { %v1778_v20 = vpop.f32.mrf.mxu0  ;;  %1238 = vmatpush3.msra.mxu1 %v681_v42  ;;  %v668_v42 = vadd.f32 %v1367_v6, %v1714_v21  ;;  %v735_v53 = vmax.f32 %v663_v61, 0.0 }
 0x121   :  { %1239 = vmatprep.subr.mxu1 %v696_v63 }
 0x122   :  { %v1348_v58 = vpop.f32.mrf.mxu0  ;;  %1240 = vmatpush3.msra.mxu1 %v680_v18  ;;  %v737_v18 = vmax.f32 %v671_v37, 0.0  ;;  %v736_v6 = vmax.f32 %v668_v42, 0.0  ;;  %v620_v42 = vadd.f32 %v1683_v1, %v1714_v21  ;;  %v612_v1 = vadd.f32 %v1714_v21, %v1689_v4  ;;  %v1438_v4 = vld [vmem:[%s1899_s5 + $0x18] sm:$0xff]  }
 0x123   :  { %1241 = vmatprep.subr.mxu1 %v695_v55 }
 0x124   :  { %v1788_v28 = vpop.f32.mrf.mxu0  ;;  %1242 = vmatpush3.msra.mxu1 %v679_v23 }
 0x125   :  { %1243 = vmatprep.subr.mxu1 %v694_v27  ;;  %v655_v27 = vadd.f32 %v1747_v12, %v1714_v21  ;;  %v647_v12 = vadd.f32 %v1714_v21, %v1760_v14 }
 0x126   :  { %v1351_v0 = vpop.f32.mrf.mxu0  ;;  %1244 = vmatpush3.msra.mxu1 %v678_v56  ;;  %v591_v56 = vadd.f32 %v1348_v58, %v1714_v21  ;;  %v583_v58 = vadd.f32 %v1714_v21, %v1788_v28 }
 0x127   :  { %1245 = vmatprep.subr.mxu1 %v693_v3  ;;  %v604_v63 = vadd.f32 %v1351_v0, %v1714_v21  ;;  %v733_v17 = vmax.f32 %v655_v27, 0.0  ;;  %v732_v0 = vmax.f32 %v652_v25, 0.0  ;;  %v731_v14 = vmax.f32 %v647_v12, 0.0 }
 0x128   :  { %v595_v36 = vpop.f32.mrf.mxu0  ;;  %1246 = vmatpush3.msra.mxu1 %v677_v29  ;;  %v717_v59 = vmax.f32 %v591_v56, 0.0  ;;  %v715_v28 = vmax.f32 %v583_v58, 0.0 }
 0x129   :  { %1247 = vmatprep.subr.mxu1 %v692_v31  ;;  %v720_v23 = vmax.f32 %v604_v63, 0.0  ;;  %v596_v8 = vadd.f32 %v1714_v21, %v595_v36  ;;  %v572_v36 = vadd.f32 %v1745_v26, %v1714_v21  ;;  %v564_v26 = vadd.f32 %v1714_v21, %v1752_v30 }
 0x12a   :  { %v1352_v41 = vpop.f32.mrf.mxu0  ;;  %1248 = vmatpush3.msra.mxu1 %v676_v32  ;;  %v575_v32 = vadd.f32 %v1758_v35, %v1714_v21  ;;  %v567_v35 = vadd.f32 %v1714_v21, %v1766_v39 }
 0x12b   :  { %v607_v2 = vadd.f32 %v1352_v41, %v1714_v21  ;;  %1249 = vmatprep.subr.mxu1 %v691_v5  ;;  %v718_v29 = vmax.f32 %v596_v8, 0.0  ;;  %v729_v5 = vmax.f32 %v639_v47, 0.0  ;;  %v712_v51 = vmax.f32 %v572_v36, 0.0 }
 0x12c   :  { %v598_v48 = vpop.f32.mrf.mxu0  ;;  %1250 = vmatpush3.msra.mxu1 %v675_v9  ;;  %v713_v37 = vmax.f32 %v575_v32, 0.0  ;;  %v728_v9 = vmax.f32 %v636_v57, 0.0  ;;  %v623_v41 = vadd.f32 %v1695_v7, %v1714_v21  ;;  %v711_v39 = vmax.f32 %v567_v35, 0.0 }
 0x12d   :  { %v721_v11 = vmax.f32 %v607_v2, 0.0  ;;  %1251 = vmatprep.subr.mxu1 %v690_v54  ;;  %v599_v55 = vadd.f32 %v1714_v21, %v598_v48  ;;  %v559_v54 = vadd.f32 %v1734_v60, %v1714_v21  ;;  %v556_v2 = vadd.f32 %v1724_v33, %v1714_v21 }
 0x12e   :  { %1252 = vmatpush3.msra.mxu1 %v674_v44  ;;  %v710_v30 = vmax.f32 %v564_v26, 0.0  ;;  %v725_v44 = vmax.f32 %v623_v41, 0.0  ;;  %v615_v7 = vadd.f32 %v1714_v21, %v1701_v10  ;;  %v551_v60 = vadd.f32 %v1714_v21, %v1740_v22 }
 0x12f   :  { %826 = vmatmul.mubr.f32.vlgmr.msra.gmra.mxu1 %v1648_v43  ;;  %1256 = vmatprep.subr.mxu1 %v737_v18  ;;  %v719_v3 = vmax.f32 %v599_v55, 0.0  ;;  %v588_v43 = vadd.f32 %v1772_v45, %v1714_v21  ;;  %v580_v45 = vadd.f32 %v1714_v21, %v1778_v20  ;;  %v709_v63 = vmax.f32 %v559_v54, 0.0 }
 0x130   :  { %1257 = vmatpush3.msra.mxu1 %v721_v11  ;;  %895 = vmatprep.mubr.f32.mxu1 %v756_v52  ;;  %v724_v48 = vmax.f32 %v620_v42, 0.0  ;;  %v708_v52 = vmax.f32 %v556_v2, 0.0  ;;  %v548_v33 = vadd.f32 %v1714_v21, %v1730_v40  ;;  %v723_v18 = vmax.f32 %v615_v7, 0.0  ;;  %v1439_v21 = vld [vmem:[%s1899_s5 + $0x10] sm:$0xff]   ;;  %v1440_v40 = vld [vmem:[%s1899_s5 + $0x8] sm:$0xff]  }
 0x131   :  { %1258 = vmatprep.subr.mxu1 %v736_v6  ;;  %v716_v31 = vmax.f32 %v588_v43, 0.0  ;;  %v714_v20 = vmax.f32 %v580_v45, 0.0  ;;  %v707_v61 = vmax.f32 %v551_v60, 0.0  ;;  %v722_v10 = vmax.f32 %v612_v1, 0.0 }
 0x132   :  { %1259 = vmatpush3.msra.mxu1 %v720_v23  ;;  %v706_v11 = vmax.f32 %v548_v33, 0.0  ;;  %v1454_v22 = vmov 0.0  }
 0x133   :  { %1260 = vmatprep.subr.mxu1 %v735_v53  ;;  %v904_v53 = vpop.permute.xlu0 %903 }
 0x134   :  { %1261 = vmatpush3.msra.mxu1 %v719_v3 }
 0x135   :  { %1262 = vmatprep.subr.mxu1 %v734_v50  ;;  %v1175_v50 = vld [vmem:[%s1900_s6] ss:$0 sm:$0xff]  ;;  %s1456_s6 = smov 64  }
 0x136   :  { %1263 = vmatpush3.msra.mxu1 %v718_v29 }
 0x137   :  { %1264 = vmatprep.subr.mxu1 %v733_v17 }
 0x138   :  { %1265 = vmatpush3.msra.mxu1 %v717_v59 }
 0x139   :  { %1266 = vmatprep.subr.mxu1 %v732_v0 }
 0x13a   :  { %1267 = vmatpush3.msra.mxu1 %v716_v31  ;;  %v993_v31 = vand.u32 127, %v744_v38  ;;  %v1442_v38 = vld [vmem:[%s1901_s7 + $0x8] sm:$0xff]  }
 0x13b   :  { %1268 = vmatprep.subr.mxu1 %v731_v14 }
 0x13c   :  { %1269 = vmatpush3.msra.mxu1 %v715_v28  ;;  %vm994_vm5 = vcmp.ge.s32.totalorder %v993_v31, 64  ;;  %vm995_vm6 = vcmp.lt.s32.totalorder %v993_v31, 96 }
 0x13d   :  { %1270 = vmatprep.subr.mxu1 %v730_v62  ;;  %vm996_vm7 = vmand %vm994_vm5, %vm995_vm6 }
 0x13e   :  { %1271 = vmatpush3.msra.mxu1 %v714_v20  ;;  %v1443_v20 = vld [vmem:[%s1901_s7] sm:$0xff]  }
 0x13f   :  { %1272 = vmatprep.subr.mxu1 %v729_v5 }
 0x140   :  { %1273 = vmatpush3.msra.mxu1 %v713_v37 }
 0x141   :  { %1274 = vmatprep.subr.mxu1 %v728_v9  ;;  %v1182_v9 = vld [vmem:[%s1902_s8] ss:$0 sm:$0xff] }
 0x142   :  { %1275 = vmatpush3.msra.mxu1 %v712_v51 }
 0x143   :  { %1276 = vmatprep.subr.mxu1 %v727_v24 }
 0x144   :  { %1277 = vmatpush3.msra.mxu1 %v711_v39 }
 0x145   :  { %1278 = vmatprep.subr.mxu1 %v726_v16 }
 0x146   :  { %1279 = vmatpush3.msra.mxu1 %v710_v30 }
 0x147   :  { %1280 = vmatprep.subr.mxu1 %v725_v44 }
 0x148   :  { %1281 = vmatpush3.msra.mxu1 %v709_v63 }
 0x149   :  { %1282 = vmatprep.subr.mxu1 %v724_v48 }
 0x14a   :  { %1283 = vmatpush3.msra.mxu1 %v708_v52 }
 0x14b   :  { %1284 = vmatprep.subr.mxu1 %v723_v18 }
 0x14c   :  { %1285 = vmatpush3.msra.mxu1 %v707_v61 }
 0x14d   :  { %1286 = vmatprep.subr.mxu1 %v722_v10 }
 0x14e   :  { %1287 = vmatpush3.msra.mxu1 %v706_v11 }
 0x14f   :  { %896 = vmatmul.mubr.f32.vlgmr.msra.gmra.mxu1 %v1652_v46  ;;  %1369 = vmatprep.subr.bf16.mxu1 %v1454_v22  ;;  %v1441_v46 = vld [vmem:[%s1899_s5] sm:$0xff]  }
 0x150   :  { %1370 = vmatpush3.bf16.msra.mxu1 %v1438_v4  ;;  %1377 = vmatprep.mubr.msk.bf16.mxu1 %vm1455_vm2, %v1454_v22 }
 0x151   :  { %1371 = vmatprep.subr.bf16.mxu1 %v1454_v22 }
 0x154   :  { %1372 = vmatpush3.bf16.msra.mxu1 %v1439_v21 }
 0x155   :  { %1373 = vmatprep.subr.bf16.mxu1 %v1454_v22 }
 0x158   :  { %1374 = vmatpush3.bf16.msra.mxu1 %v1440_v40 }
 0x159   :  { %1375 = vmatprep.subr.bf16.mxu1 %v1454_v22 }
 0x15c   :  { %1376 = vmatpush3.bf16.msra.mxu1 %v1441_v46 }
 0x15d   :  { %1381 = vmatprep.subr.bf16.mxu1 %v1454_v22 }
 0x1ef   :  { %v1253_v55 = vpop.f32.mrf.mxu1 }
 0x1f1   :  { %v1254_v6 = vpop.f32.mrf.mxu1 }
 0x1f2   :  { %v1255_v8 = vadd.f32 %v1254_v6, %v1253_v55 }
 0x20f   :  { %v1288_v15 = vpop.f32.mrf.mxu1 }
 0x211   :  { %v1289_v23 = vpop.f32.mrf.mxu1 }
 0x212   :  { %v1290_v27 = vadd.f32 %v1289_v23, %v1288_v15 }
 0x214   :  { %v898_v56 = vadd.f32 %v1290_v27, %v1255_v8 }
 0x216   :  { %v907_v3 = vsel %vm906_vm3, %v898_v56, %v904_v53 }
 0x217   :  { %v908_v25 = vpack.c.bf16 %v907_v3, %v907_v3 }
 0x219   :  { %1378 = vmatmul.mubr.msk.bf16.vlgmr.msra.gmra.mxu1 %vm948_vm4, %v908_v25 }
 0x21a   :  { %1385 = vmatprep.mubr.msk.bf16.mxu1 %vm1455_vm2, %v1454_v22  ;;  %1382 = vmatpush3.bf16.msra.mxu1 %v1442_v38 }
 0x21b   :  { %1383 = vmatprep.subr.bf16.mxu1 %v1454_v22 }
 0x21e   :  { %1384 = vmatpush3.bf16.msra.mxu1 %v1443_v20 }
 0x2d9   :  { %v986_v43 = vpop.f32.mrf.mxu1 }
 0x2da   :  { %v987_v29 = vadd.f32 %v1175_v50, %v986_v43 }
 0x2db   :  { %v1379_v17 = vpop.f32.mrf.mxu1 }
 0x2dc   :  { %v1181_v12 = vmul.f32 -1.442695, %v987_v29 }
 0x2dd   :  { %v989_v59 = vpop.f32.mrf.mxu1 }
 0x2de   :  { %1444 = vpow2.f32 %v1181_v12 }
 0x2df   :  { %v1380_v58 = vpop.f32.mrf.mxu1  ;;  %1446 = vtanh.f32 %v987_v29 }
 0x2eb   :  { %v1445_v0 = vpop.eup %1444 }
 0x2ec   :  { %v1001_v34 = vadd.f32 1.0, %v1445_v0  ;;  %v1447_v45 = vpop.eup %1446 }
 0x2ee   :  { %1448 = vrcp.f32 %v1001_v34 }
 0x2fb   :  { %v1449_v47 = vpop.eup %1448 }
 0x2fc   :  { %v1004_v14 = vsel %vm996_vm7, %v1447_v45, %v1449_v47 }
 0x2fd   :  { %1007 = vrot.lane.b32.xlu0 %v1004_v14, %s1456_s6  ;;  %v1005_v57 = vmul.f32 %v1004_v14, %v1661_v49 }
 0x36f   :  { %v1008_v32 = vpop.permute.xlu0 %1007 }
 0x370   :  { %v1010_v28 = vmul.f32 %v1008_v32, %v1004_v14 }
 0x372   :  { %1012 = vrot.lane.b32.xlu1 %v1010_v28, %s1453_s16 }
 0x3e4   :  { %v1013_v62 = vpop.permute.xlu1 %1012 }
 0x3e5   :  { %v1015_v36 = vadd.f32 %v1013_v62, %v1005_v57 }
 0x3e7   :  { %1450 = vtanh.f32 %v1015_v36 }
 0x3f4   :  { %v1451_v5 = vpop.eup %1450 }
 0x3f5   :  { %1018 = vrot.lane.b32.xlu1 %v1451_v5, %s1456_s6 }
 0x467   :  { %v1019_v19 = vpop.permute.xlu1 %1018 }
 0x468   :  { %v1021_v37 = vmul.f32 %v1019_v19, %v1004_v14 }
 0x46a   :  { %v1022_v35 = vpack.c.bf16 %v1021_v37, %v1021_v37  ;;  %1093 = vrot.lane.b32.xlu1 %v1021_v37, %s1453_s16 }
 0x46c   :  { %1035 = vrot.lane.b32.xlu0 %v1022_v35, %s1453_s16 }
 0x4dc   :  { %v1094_v54 = vpop.permute.xlu1 %1093 }
 0x4dd   :  { %v1100_v39 = vsel %vm906_vm3, %v1094_v54, %v1015_v36 }
 0x4de   :  { %v1036_v49 = vpop.permute.xlu0 %1035 }
 0x4df   :  { %1386 = vmatmul.mubr.msk.bf16.vlgmr.msra.gmra.mxu1 %vm906_vm3, %v1036_v49 }
 0x59f   :  { %v1086_v13 = vpop.f32.mrf.mxu1 }
 0x5a0   :  { %v1087_v51 = vadd.f32 %v1182_v9, %v1086_v13 }
 0x5a1   :  { %v1387_v26 = vpop.f32.mrf.mxu1 }
 0x5a2   :  { %1097 = vrot.lane.b32.xlu0 %v1087_v51, %s1456_s6 }
 0x5a3   :  { %v1089_v41 = vpop.f32.mrf.mxu1 }
 0x5a5   :  { %v1388_v24 = vpop.f32.mrf.mxu1 }
 0x614   :  { %v1098_v42 = vpop.permute.xlu0 %1097 }
 0x615   :  { %v1101_v16 = vsel %vm948_vm4, %v1100_v39, %v1098_v42 }
 0x616   :  { %1102 = vst [vmem:[%s1903_s9] sm:$0x3] %v1101_v16 }

</bundles_post_ra>
